<compile_context>
chip_gen: v6e
topology: v6e:2x2x1
jax: 0.10.0
libtpu: 0.0.40
codegen_flags: <defaults>
</compile_context>

<pallas_src>
import math

import jax
import jax.numpy as jnp
from jax.experimental import pallas as pl
from jax.experimental.pallas import tpu as pltpu


_LANES = 128
_MIN_BLOCK_BYTES = 1 * 1024 * 1024     # never shrink blocks below ~1 MiB just for depth
_TARGET_GRID_STEPS = 8                 # >= 4 steps per TensorCore on dual-TC (v7x) chips
_MAX_UNALIGNED_COLS = 8192             # divisor-search bound for non-128-multiple sizes
_CHUNK_DATA_BYTES = 512 * 1024         # per-block data bytes in the (1, total) fallback


def _copy_kernel(x_ref, o_ref):
    # Identity copy of the current VMEM tile.
    o_ref[...] = x_ref[...]


def _cdiv(a, b):
    return -(-a // b)


def _round_up(v, m):
    return _cdiv(v, m) * m


def _sublane_multiple(dtype):
    # 8 sublanes for 32-bit dtypes, 16 for bf16/fp16, 32 for int8/fp8 (packed rows).
    return max(8, 32 // jnp.dtype(dtype).itemsize)


def _hw_params():
    """Generation-gated (target_block_bytes, vmem_limit_bytes).

    v5e/v6e: 128 MiB VMEM -> 16 MiB blocks, 96 MiB limit (4 double buffers = 64 MiB).
    v7x:      64 MiB VMEM ->  8 MiB blocks, 48 MiB limit (4 double buffers = 32 MiB).
    Falls back to a conservative 4 MiB / 48 MiB if the hardware query fails.
    """
    target_block, vmem_limit = 4 * 1024 * 1024, 48 * 1024 * 1024
    try:
        info = pltpu.get_tpu_info()
        vmem_cap = getattr(info, "vmem_capacity_bytes", None)
        if vmem_cap:
            if vmem_cap >= 96 * 1024 * 1024:      # v5e / v6e class (128 MiB VMEM)
                target_block, vmem_limit = 16 * 1024 * 1024, 96 * 1024 * 1024
            else:                                 # v7x class (64 MiB VMEM)
                target_block, vmem_limit = 8 * 1024 * 1024, 48 * 1024 * 1024
    except Exception:
        pass
    return target_block, vmem_limit


def _identity_copy_2d(slab, tile_rows, tile_cols, vmem_limit_bytes, donate):
    """One HBM->VMEM->HBM pass over `slab`, tiled on a (rows, cols) cdiv grid."""
    rows, cols = slab.shape
    grid = (_cdiv(rows, tile_rows), _cdiv(cols, tile_cols))
    extra = {"input_output_aliases": {0: 0}} if donate else {}
    return pl.pallas_call(
        _copy_kernel,
        out_shape=jax.ShapeDtypeStruct((rows, cols), slab.dtype),
        grid_spec=pltpu.PrefetchScalarGridSpec(
            num_scalar_prefetch=0,
            grid=grid,
            in_specs=[pl.BlockSpec((tile_rows, tile_cols), lambda i, j: (i, j))],
            out_specs=pl.BlockSpec((tile_rows, tile_cols), lambda i, j: (i, j)),
        ),
        compiler_params=pltpu.CompilerParams(
            dimension_semantics=("parallel", "parallel"),
            vmem_limit_bytes=vmem_limit_bytes,
        ),
        cost_estimate=pl.CostEstimate(
            flops=0,
            transcendentals=0,
            bytes_accessed=2 * rows * cols * slab.dtype.itemsize,
        ),
        **extra,
    )(slab)


def _choose_tile_rows(rows, padded_row_bytes, sublane_mult, target_block_bytes):
    """Rows per block.

    Priorities:
      * block <= target_block_bytes so 2x(in+out) double buffers fit VMEM;
      * >= ~8 grid steps so block i+1's read DMA overlaps block i-1's writeback
        and both TensorCores of a dual-TC chip (v7x) get work;
      * blocks never below ~1 MiB of data (per-step overhead ~0.35 us);
      * tile_rows is a multiple of the dtype-native sublane count, or full rows.
    """
    if rows <= sublane_mult:
        return rows
    target_rows = max(
        sublane_mult,
        (target_block_bytes // padded_row_bytes) // sublane_mult * sublane_mult,
    )
    deep_rows = _round_up(_cdiv(rows, _TARGET_GRID_STEPS), sublane_mult)
    floor_rows = max(
        sublane_mult,
        (_MIN_BLOCK_BYTES // padded_row_bytes) // sublane_mult * sublane_mult,
    )
    tile_rows = min(target_rows, max(deep_rows, floor_rows))
    return rows if tile_rows >= rows else tile_rows


def _find_unaligned_cols(total):
    """Largest divisor of `total` in [8, _MAX_UNALIGNED_COLS], preferring one
    that leaves >= 8 rows; None if `total` has no divisor >= 8 (e.g. prime)."""
    fallback = None
    for c in range(min(total, _MAX_UNALIGNED_COLS), 7, -1):
        if total % c == 0:
            if total // c >= 8:
                return c
            if fallback is None:
                fallback = c
    return fallback


def _resolve_dim(dim, total):
    """Resolve a single -1 like torch.Tensor.view and validate the element count."""
    dim = list(dim)
    if -1 in dim:
        known = 1
        for d in dim:
            if d != -1:
                known *= d
        if known == 0 or total % known != 0:
            raise ValueError(f"cannot view {total} elements as shape {dim}")
        dim[dim.index(-1)] = total // known
    if math.prod(dim) != total:
        raise ValueError(f"shape {dim} is invalid for input of size {total}")
    return dim


def pallas_reshape(x: jax.Array, dim, donate: bool = False) -> jax.Array:
    """Equivalent of torch.Tensor.view(dim) with the data path in a Pallas kernel.

    Set donate=True (and actually donate `x` at the jit boundary) to copy in
    place via input_output_aliases; with a non-donated input XLA would insert a
    defensive copy, so it stays off by default.
    """
    total = x.size
    dim = _resolve_dim(dim, total)

    # TODO(synk): like torch .view this assumes a contiguous row-major layout;
    # jnp.ravel on a non-default XLA layout silently copies instead of raising.
    flat = jnp.ravel(x)
    if total == 0:
        return flat.reshape(dim)

    itemsize = jnp.dtype(x.dtype).itemsize
    sublane_mult = _sublane_multiple(x.dtype)
    target_block_bytes, vmem_limit_bytes = _hw_params()

    if total % _LANES == 0:
        # Lane-dense slab: widest multiple of 128 that divides `total` while
        # leaving enough rows to tile along the sublane axis.
        cols = _LANES
        for c in (1024, 512, 256, 128):
            if total % c == 0 and (total // c) >= 2 * sublane_mult:
                cols = c
                break
        rows = total // cols
        slab = flat.reshape(rows, cols)
        tile_rows = _choose_tile_rows(
            rows, cols * itemsize, sublane_mult, target_block_bytes)
        out_slab = _identity_copy_2d(slab, tile_rows, cols, vmem_limit_bytes, donate)
    else:
        cols = _find_unaligned_cols(total)
        if cols is not None:
            # 2-D factorisation: the block's last dim equals the full (non-128-
            # multiple) array dim, so it is exempt from the 128 rule; rows stay
            # sublane-dense and the row grid pipelines with masked last block.
            rows = total // cols
            slab = flat.reshape(rows, cols)
            padded_row_bytes = _round_up(cols, _LANES) * itemsize
            tile_rows = _choose_tile_rows(
                rows, padded_row_bytes, sublane_mult, target_block_bytes)
            out_slab = _identity_copy_2d(
                slab, tile_rows, cols, vmem_limit_bytes, donate)
        else:
            # Degenerate (e.g. prime) element count: chunk the flat buffer along
            # the lane axis in 128-multiple blocks; Pallas masks the ragged final
            # block.  Chunks are kept small because a 1-row block occupies only
            # 1 of 8 sublanes per VMEM tile (~8x VMEM footprint).
            chunk = max(_LANES, (_CHUNK_DATA_BYTES // itemsize) // _LANES * _LANES)
            if total <= chunk:
                chunk = total  # single full-extent block, exempt from the 128 rule
            slab = flat.reshape(1, total)
            out_slab = _identity_copy_2d(slab, 1, chunk, vmem_limit_bytes, donate)

    # Free metadata reshape (slab is contiguous and holds exactly `total` elems).
    return out_slab.reshape(dim)


if __name__ == "__main__":
    key = jax.random.PRNGKey(0)
    # Small NCHW-like input: batch=2, channels=4, spatial=16x16.
    x = jax.random.normal(key, (2, 4, 16, 16), dtype=jnp.float32)

    # e.g. flatten per-sample, like x.view([2, -1]); exercises -1 resolution.
    target_dim = (2, -1)

    reshape_fn = jax.jit(pallas_reshape, static_argnames=("dim", "donate"))
    y = reshape_fn(x, dim=target_dim)
    y = jax.block_until_ready(y)

    # Correctness check against plain JAX reshape (== torch .view semantics).
    ref = jnp.reshape(x, (2, 4 * 16 * 16))
    assert y.shape == (2, 4 * 16 * 16), y.shape
    assert y.dtype == x.dtype
    assert bool(jnp.array_equal(y, ref))

    print("KERNEL_OK")
</pallas_src>

<mosaic_0001>
module attributes {stable_mosaic.version = 11 : i64} {
  func.func @_copy_kernel(%arg0: i32, %arg1: i32, %arg2: memref<16x128xf32, #tpu.memory_space<vmem>>, %arg3: memref<16x128xf32, #tpu.memory_space<vmem>>) attributes {dimension_semantics = [#tpu.dimension_semantics<parallel>, #tpu.dimension_semantics<parallel>], iteration_bounds = array<i64: 1, 1>, scalar_prefetch = 0 : i64, scratch_operands = 0 : i64, tpu.core_type = #tpu.core_type<tc>, window_params = [{transform_indices = @transform_0, window_bounds = array<i64: 16, 128>}, {transform_indices = @transform_1, window_bounds = array<i64: 16, 128>}]} {
    %c0 = arith.constant 0 : index
    %c0_0 = arith.constant 0 : index
    %0 = vector.load %arg2[%c0, %c0_0] : memref<16x128xf32, #tpu.memory_space<vmem>>, vector<16x128xf32>
    %c0_1 = arith.constant 0 : index
    %c0_2 = arith.constant 0 : index
    %1 = vector.load %arg3[%c0_1, %c0_2] : memref<16x128xf32, #tpu.memory_space<vmem>>, vector<16x128xf32>
    tpu.vector_store %arg3[%c0_1, %c0_2], %0 {strides = array<i32>} : memref<16x128xf32, #tpu.memory_space<vmem>>, vector<16x128xf32>,
    return
  }
  func.func @transform_0(%arg0: i32, %arg1: i32) -> (i32, i32) {
    %c0_i32 = arith.constant 0 : i32
    return %arg0, %arg1 : i32, i32
  }
  func.func @transform_1(%arg0: i32, %arg1: i32) -> (i32, i32) {
    %c0_i32 = arith.constant 0 : i32
    return %arg0, %arg1 : i32, i32
  }
}

</mosaic_0001>

<bundles_post_ra>
// kernel: pallas_reshape.1
= control target key start
LH: loop header
LB: loop body
LE: loop exit
PB: predicated region body
PF: predicated region fallthrough
CT: control target
= control target key end

     0   :  { %s38_s0 = inlined_call_operand.vmem [shape: f32[16,128], index: 0, kind: input, shape index: {}]   ;;  %s39_s1 = inlined_call_operand.vmem [shape: f32[16,128], index: 1, kind: output, shape index: {}]  }
   0x1   :  { %v8_v0 = vld [vmem:[%s38_s0] sm:$0xff]  ;;  %v9_v1 = vld [vmem:[%s38_s0 + $0x8] sm:$0xff] }
   0x2   :  { %10 = vst [vmem:[%s39_s1] sm:$0xff] %v8_v0  ;;  %11 = vst [vmem:[%s39_s1 + $0x8] sm:$0xff] %v9_v1 }

</bundles_post_ra>
